<compile_context>
chip_gen: v6e
topology: v6e:2x2x1
jax: 0.10.0
libtpu: 0.0.40
codegen_flags: <defaults>
</compile_context>

<pallas_src>
import jax
import jax.numpy as jnp
from jax.experimental import pallas as pl
from jax.experimental.pallas import tpu as pltpu


# ---------------------------------------------------------------------------
# Kernel 1: fused bidirectional LSTM + FC head (single-TensorCore form).
# Gate column order (pre-packed in wrapper): [i, f, o, g].
# ---------------------------------------------------------------------------
def bilstm_fused_kernel(x_ref,      # (T*B, E)  bf16  embedded inputs, time-major, flattened
                        w_in_ref,   # (E, 8H)   bf16  [wih_f^T | wih_b^T]   (gate order i,f,o,g)
                        b_in_ref,   # (1, 8H)   f32   [b_f | b_b]  (b_ih + b_hh per direction)
                        whh_ref,    # (H, 8H)   bf16  [whh_f^T | whh_b^T]   (packed along N)
                        wfc_ref,    # (2B, H)   f32   rows 0:B = wfc[:H,0], rows B:2B = wfc[H:,0]
                        bfc_ref,    # (1, 1)    f32
                        out_ref):   # (B, 1)    f32
    TB, _ = x_ref.shape
    B = out_ref.shape[0]
    H = wfc_ref.shape[1]
    T = TB // B
    H4 = 4 * H

    # ---- hoisted input projection: one MXU matmul for both directions ----
    gx = jnp.dot(x_ref[...], w_in_ref[...],
                 preferred_element_type=jnp.float32) + b_in_ref[...]      # (T*B, 8H) f32
    # TODO(synk): cast gx to bf16 here when it becomes VMEM-resident at large T*B (v7x 64MiB).

    whh = whh_ref[...]                                                    # (H, 8H) bf16

    h = None       # (2B, H) f32: rows 0:B = fwd hidden, rows B:2B = bwd hidden
    c = None       # (2B, H) f32 cell state
    h_bf = None    # (2B, H) bf16 carry for the recurrent matmul

    # ---- fully unrolled recurrence (T is a small compile-time constant) ----
    for t in range(T):
        gx_f = gx[t * B:(t + 1) * B, 0:H4]                    # fwd consumes x[t]
        gx_b = gx[(T - 1 - t) * B:(T - t) * B, H4:2 * H4]     # bwd consumes x[T-1-t]
        gates = jnp.concatenate([gx_f, gx_b], axis=0)         # (2B, 4H) f32

        if t > 0:
            # ONE recurrent MXU push per step; slice per-direction halves (128-lane aligned)
            rec = jnp.dot(h_bf, whh, preferred_element_type=jnp.float32)   # (2B, 8H)
            gates = gates + jnp.concatenate([rec[0:B, 0:H4], rec[B:, H4:]], axis=0)

        # gate order [i, f, o, g]: sigmoid on lanes 0:3H only, tanh on lanes 3H:4H only
        sig = jax.nn.sigmoid(gates[:, 0:3 * H])
        g_g = jnp.tanh(gates[:, 3 * H:H4])
        i_g = sig[:, 0:H]
        f_g = sig[:, H:2 * H]
        o_g = sig[:, 2 * H:3 * H]

        c = i_g * g_g if t == 0 else f_g * c + i_g * g_g      # (2B, H) f32
        h = o_g * jnp.tanh(c)                                 # (2B, H) f32

        if t < T - 1:
            h_bf = h.astype(jnp.bfloat16)

    # ---- FC head: hf @ wfc[:H] + hb @ wfc[H:]  (VPU mul + lane reduce, no MXU) ----
    # TODO(synk): emit a lane-dense (1, B) output if B grows (masked vst is fine at B=2).
    s = jnp.sum(h * wfc_ref[...], axis=1, keepdims=True)      # (2B, 1)
    out_ref[...] = (s[0:B] + s[B:] + bfc_ref[...]).astype(out_ref.dtype)


# ---------------------------------------------------------------------------
# Kernel 2: per-direction LSTM recurrence (two-TensorCore form for v7x).
# grid=(2,) "parallel": direction 0 = forward, direction 1 = backward.
# ---------------------------------------------------------------------------
def bilstm_dir_kernel(x_ref,       # (T*B, E) bf16  shared, time-major
                      w_in_ref,    # (E, 4H)  bf16  this direction's input weight (i,f,o,g)
                      b_in_ref,    # (1, 4H)  f32
                      whh_ref,     # (H, 4H)  bf16
                      h_out_ref):  # (B, H)   f32   final hidden for this direction
    d = pl.program_id(0)
    TB, _ = x_ref.shape
    B, H = h_out_ref.shape
    T = TB // B
    H4 = 4 * H

    gx = jnp.dot(x_ref[...], w_in_ref[...],
                 preferred_element_type=jnp.float32) + b_in_ref[...]      # (T*B, 4H) f32
    whh = whh_ref[...]                                                    # (H, 4H) bf16

    # direction blend mask (hoisted broadcast): 1.0 for fwd core, 0.0 for bwd core
    sel_f = jnp.broadcast_to((d == 0).astype(jnp.float32), (B, H4))
    sel_b = 1.0 - sel_f

    h = None
    c = None
    for t in range(T):
        g_f = gx[t * B:(t + 1) * B, :]                        # fwd reads x[t]
        g_b = gx[(T - 1 - t) * B:(T - t) * B, :]              # bwd reads x[T-1-t]
        gates = sel_f * g_f + sel_b * g_b                     # (B, 4H) f32

        if t > 0:
            gates = gates + jnp.dot(h.astype(jnp.bfloat16), whh,
                                    preferred_element_type=jnp.float32)

        sig = jax.nn.sigmoid(gates[:, 0:3 * H])
        g_g = jnp.tanh(gates[:, 3 * H:H4])
        i_g = sig[:, 0:H]
        f_g = sig[:, H:2 * H]
        o_g = sig[:, 2 * H:3 * H]

        c = i_g * g_g if t == 0 else f_g * c + i_g * g_g
        h = o_g * jnp.tanh(c)

    h_out_ref[...] = h.astype(h_out_ref.dtype)


# ---------------------------------------------------------------------------
# One-time parameter packing (hoisted out of the per-call forward).
# ---------------------------------------------------------------------------
def prepare_params(params, batch_size):
    H = params["whh_f"].shape[0]
    B = batch_size

    def reorder(w):  # last-axis gate order [i, f, g, o] -> [i, f, o, g]
        return jnp.concatenate([w[..., 0:2 * H], w[..., 3 * H:4 * H],
                                w[..., 2 * H:3 * H]], axis=-1)

    wih_f, wih_b = reorder(params["wih_f"]), reorder(params["wih_b"])
    whh_f, whh_b = reorder(params["whh_f"]), reorder(params["whh_b"])
    b_f, b_b = reorder(params["b_f"]), reorder(params["b_b"])

    wfc_rows = jnp.stack([params["wfc"][:H, 0], params["wfc"][H:, 0]], axis=0)   # (2, H)

    packed = {
        "H": H,
        # ---- fused (single-TC) form ----
        "w_in": jnp.concatenate([wih_f, wih_b], axis=1).astype(jnp.bfloat16),    # (E, 8H)
        "b_in": jnp.concatenate([b_f, b_b], axis=1),                             # (1, 8H)
        "whh_both": jnp.concatenate([whh_f, whh_b], axis=1).astype(jnp.bfloat16),# (H, 8H)
        "wfc_exp": jnp.repeat(wfc_rows, B, axis=0),                              # (2B, H)
        "bfc": params["bfc"],                                                    # (1, 1)
        # ---- per-direction (two-TC) form ----
        "w_in_stack": jnp.stack([wih_f, wih_b], axis=0).astype(jnp.bfloat16),    # (2, E, 4H)
        "b_stack": jnp.stack([b_f, b_b], axis=0),                                # (2, 1, 4H)
        "whh_stack": jnp.stack([whh_f, whh_b], axis=0).astype(jnp.bfloat16),     # (2, H, 4H)
        "wfc_f": params["wfc"][:H, 0],                                           # (H,)
        "wfc_b": params["wfc"][H:, 0],                                           # (H,)
    }
    # Materialize now so the per-call path is just the pallas_call(s).
    return {k: (jax.block_until_ready(v) if isinstance(v, jax.Array) else v)
            for k, v in packed.items()}


def _has_two_tensorcores():
    """Heuristic: split directions across cores on chips with 2 TensorCores."""
    try:
        dev = jax.devices()[0]
        if dev.platform != "tpu":
            return False
        kind = dev.device_kind.lower()
        return any(tag in kind for tag in ("v7", "7x", "v4", "v5p"))
    except Exception:  # pragma: no cover
        return False


# ---------------------------------------------------------------------------
# Forward wrapper.
# ---------------------------------------------------------------------------
def bilstm_classifier_forward(embedded_tbe, packed, *, split_directions=None):
    """embedded_tbe: (T, B, E) float32, time-major; returns logits of shape (B,)."""
    T, B, E = embedded_tbe.shape
    H = packed["H"]
    if split_directions is None:
        split_directions = _has_two_tensorcores()

    x = embedded_tbe.reshape(T * B, E).astype(jnp.bfloat16)   # only per-call input prep

    if split_directions:
        # v7x-style: the two independent directions run on the two TensorCores.
        h_dirs = pl.pallas_call(
            bilstm_dir_kernel,
            out_shape=jax.ShapeDtypeStruct((2, B, H), jnp.float32),
            grid=(2,),
            in_specs=[
                pl.BlockSpec((T * B, E), lambda d: (0, 0)),
                pl.BlockSpec((None, E, 4 * H), lambda d: (d, 0, 0)),
                pl.BlockSpec((None, 1, 4 * H), lambda d: (d, 0, 0)),
                pl.BlockSpec((None, H, 4 * H), lambda d: (d, 0, 0)),
            ],
            out_specs=pl.BlockSpec((None, B, H), lambda d: (d, 0, 0)),
            compiler_params=pltpu.CompilerParams(dimension_semantics=("parallel",)),
        )(x, packed["w_in_stack"], packed["b_stack"], packed["whh_stack"])
        hf, hb = h_dirs[0], h_dirs[1]
        # tiny FC combine outside the kernel
        return hf @ packed["wfc_f"] + hb @ packed["wfc_b"] + packed["bfc"][0, 0]

    # fused single-invocation form (right structure for v5e/v6e, 1 TC)
    vmem = pl.BlockSpec(memory_space=pltpu.MemorySpace.VMEM)
    out = pl.pallas_call(
        bilstm_fused_kernel,
        out_shape=jax.ShapeDtypeStruct((B, 1), jnp.float32),
        in_specs=[vmem] * 6,
        out_specs=vmem,
    )(x, packed["w_in"], packed["b_in"], packed["whh_both"],
      packed["wfc_exp"], packed["bfc"])
    return out[:, 0]   # .squeeze(1)


# ------------------------- deterministic parameter init -----------------------
def init_params(key, vocab_size, embedding_dim, hidden_dim, output_dim, pad_idx):
    ks = jax.random.split(key, 12)
    H, E, O = hidden_dim, embedding_dim, output_dim
    bound = 1.0 / jnp.sqrt(jnp.float32(H))

    def u(k, shape, b=bound):
        return jax.random.uniform(k, shape, jnp.float32, -b, b)

    emb = jax.random.normal(ks[0], (vocab_size, E), jnp.float32)
    emb = emb.at[pad_idx].set(0.0)

    params = {
        "embedding": emb,
        # forward direction (stored transposed: (in, 4H)), PyTorch gate order [i, f, g, o]
        "wih_f": u(ks[1], (E, 4 * H)),
        "whh_f": u(ks[2], (H, 4 * H)),
        "b_f":   u(ks[3], (1, 4 * H)) + u(ks[4], (1, 4 * H)),   # b_ih + b_hh
        # backward direction
        "wih_b": u(ks[5], (E, 4 * H)),
        "whh_b": u(ks[6], (H, 4 * H)),
        "b_b":   u(ks[7], (1, 4 * H)) + u(ks[8], (1, 4 * H)),
        # fc: Linear(2H -> O)
        "wfc": u(ks[9], (2 * H, O), 1.0 / jnp.sqrt(jnp.float32(2 * H))),
        "bfc": u(ks[10], (1, O), 1.0 / jnp.sqrt(jnp.float32(2 * H))),
    }
    return params


# --------------------------- pure-JAX reference --------------------------------
def reference_forward(embedded_tbe, params, *, matmul_dtype=jnp.float32):
    """Reference bidirectional LSTM. matmul_dtype=bf16 mirrors the kernel's MXU operands."""
    T, B, E = embedded_tbe.shape
    H = params["whh_f"].shape[0]

    def dot(a, b):
        return jnp.dot(a.astype(matmul_dtype), b.astype(matmul_dtype),
                       preferred_element_type=jnp.float32)

    def cell(x_t, h, c, wih, whh, b):
        g = dot(x_t, wih) + dot(h, whh) + b
        i = jax.nn.sigmoid(g[:, 0:H])
        f = jax.nn.sigmoid(g[:, H:2 * H])
        gg = jnp.tanh(g[:, 2 * H:3 * H])
        o = jax.nn.sigmoid(g[:, 3 * H:4 * H])
        c = f * c + i * gg
        h = o * jnp.tanh(c)
        return h, c

    hf = jnp.zeros((B, H), jnp.float32); cf = jnp.zeros((B, H), jnp.float32)
    hb = jnp.zeros((B, H), jnp.float32); cb = jnp.zeros((B, H), jnp.float32)
    for t in range(T):
        hf, cf = cell(embedded_tbe[t], hf, cf,
                      params["wih_f"], params["whh_f"], params["b_f"])
        hb, cb = cell(embedded_tbe[T - 1 - t], hb, cb,
                      params["wih_b"], params["whh_b"], params["b_b"])
    h_cat = jnp.concatenate([hf, hb], axis=1)
    return (h_cat @ params["wfc"] + params["bfc"])[:, 0]


# ----------------------------------- main --------------------------------------
if __name__ == "__main__":
    VOCAB, E, H, O = 100, 32, 32, 1
    PAD_IDX = 0
    B, T = 2, 8

    key = jax.random.PRNGKey(0)
    k_param, k_tok = jax.random.split(key)
    params = init_params(k_param, VOCAB, E, H, O, PAD_IDX)
    packed = prepare_params(params, B)       # one-time weight packing (hoisted out of forward)

    # text_batch: integer token ids (B, T)
    text_batch = jax.random.randint(k_tok, (B, T), 0, VOCAB, dtype=jnp.int32)

    # Embedding gather directly into time-major (T, B, E); dropout(eval) == identity.
    # TODO(synk): training-mode stochastic dropout not implemented (eval semantics only).
    embedded_tbe = params["embedding"][text_batch.T]          # (T, B, E) float32

    # Run BOTH structural variants so each code path is validated on any chip.
    logits_fused = jax.block_until_ready(
        bilstm_classifier_forward(embedded_tbe, packed, split_directions=False))
    logits_split = jax.block_until_ready(
        bilstm_classifier_forward(embedded_tbe, packed, split_directions=True))
    logits_auto = jax.block_until_ready(
        bilstm_classifier_forward(embedded_tbe, packed))       # device-kind auto-select

    ref_matched = reference_forward(embedded_tbe, params, matmul_dtype=jnp.bfloat16)
    ref_f32 = reference_forward(embedded_tbe, params, matmul_dtype=jnp.float32)

    for lg in (logits_fused, logits_split, logits_auto):
        assert lg.shape == (B,)
        assert jnp.allclose(lg, ref_matched, atol=2e-3, rtol=2e-3), (lg, ref_matched)
        assert jnp.allclose(lg, ref_f32, atol=5e-2, rtol=5e-2), (lg, ref_f32)

    print("KERNEL_OK")
</pallas_src>

<mosaic_0001>
module attributes {stable_mosaic.version = 11 : i64} {
  func.func @bilstm_fused_kernel(%arg0: memref<16x32xbf16, #tpu.memory_space<vmem>>, %arg1: memref<32x256xbf16, #tpu.memory_space<vmem>>, %arg2: memref<1x256xf32, #tpu.memory_space<vmem>>, %arg3: memref<32x256xbf16, #tpu.memory_space<vmem>>, %arg4: memref<4x32xf32, #tpu.memory_space<vmem>>, %arg5: memref<1x1xf32, #tpu.memory_space<vmem>>, %arg6: memref<2x1xf32, #tpu.memory_space<vmem>>) attributes {dimension_semantics = [], scalar_prefetch = 0 : i64, scratch_operands = 0 : i64, tpu.core_type = #tpu.core_type<tc>} {
    %c0 = arith.constant 0 : index
    %c0_0 = arith.constant 0 : index
    %0 = vector.load %arg0[%c0, %c0_0] : memref<16x32xbf16, #tpu.memory_space<vmem>>, vector<16x32xbf16>
    %c0_1 = arith.constant 0 : index
    %c0_2 = arith.constant 0 : index
    %1 = vector.load %arg1[%c0_1, %c0_2] : memref<32x256xbf16, #tpu.memory_space<vmem>>, vector<32x256xbf16>
    %cst = arith.constant dense<0.000000e+00> : vector<16x256xf32>
    %2 = tpu.matmul %0, %1, %cst {dimension_numbers = #tpu.dot_dimension_numbers<[1], [0], [0], [1], [0, 0, 1, 1], [], []>} : vector<16x32xbf16>, vector<32x256xbf16>, vector<16x256xf32> -> vector<16x256xf32>
    %c0_3 = arith.constant 0 : index
    %c0_4 = arith.constant 0 : index
    %3 = vector.load %arg2[%c0_3, %c0_4] : memref<1x256xf32, #tpu.memory_space<vmem>>, vector<1x256xf32>
    %4 = vector.broadcast %3 : vector<1x256xf32> to vector<16x256xf32>
    %5 = arith.addf %2, %4 : vector<16x256xf32>
    %c0_5 = arith.constant 0 : index
    %c0_6 = arith.constant 0 : index
    %6 = vector.load %arg3[%c0_5, %c0_6] : memref<32x256xbf16, #tpu.memory_space<vmem>>, vector<32x256xbf16>
    %7 = vector.extract_strided_slice %5 {offsets = [0, 0], sizes = [2, 128], strides = [1, 1]} : vector<16x256xf32> to vector<2x128xf32>
    %8 = vector.extract_strided_slice %5 {offsets = [14, 128], sizes = [2, 128], strides = [1, 1]} : vector<16x256xf32> to vector<2x128xf32>
    %9 = tpu.concatenate %7, %8 in 0 : vector<2x128xf32>, vector<2x128xf32> -> vector<4x128xf32>
    %10 = vector.extract_strided_slice %9 {offsets = [0, 0], sizes = [4, 96], strides = [1, 1]} : vector<4x128xf32> to vector<4x96xf32>
    %11 = arith.negf %10 : vector<4x96xf32>
    %12 = math.exp %11 : vector<4x96xf32>
    %cst_7 = arith.constant 1.000000e+00 : f32
    %13 = vector.broadcast %cst_7 : f32 to vector<4x96xf32>
    %14 = arith.addf %13, %12 : vector<4x96xf32>
    %15 = arith.divf %13, %14 : vector<4x96xf32>
    %16 = vector.extract_strided_slice %9 {offsets = [0, 96], sizes = [4, 32], strides = [1, 1]} : vector<4x128xf32> to vector<4x32xf32>
    %17 = math.tanh %16 : vector<4x32xf32>
    %18 = vector.extract_strided_slice %15 {offsets = [0, 0], sizes = [4, 32], strides = [1, 1]} : vector<4x96xf32> to vector<4x32xf32>
    %19 = vector.extract_strided_slice %15 {offsets = [0, 64], sizes = [4, 32], strides = [1, 1]} : vector<4x96xf32> to vector<4x32xf32>
    %20 = arith.mulf %18, %17 : vector<4x32xf32>
    %21 = math.tanh %20 : vector<4x32xf32>
    %22 = arith.mulf %19, %21 : vector<4x32xf32>
    %23 = arith.truncf %22 : vector<4x32xf32> to vector<4x32xbf16>
    %24 = vector.extract_strided_slice %5 {offsets = [2, 0], sizes = [2, 128], strides = [1, 1]} : vector<16x256xf32> to vector<2x128xf32>
    %25 = vector.extract_strided_slice %5 {offsets = [12, 128], sizes = [2, 128], strides = [1, 1]} : vector<16x256xf32> to vector<2x128xf32>
    %26 = tpu.concatenate %24, %25 in 0 : vector<2x128xf32>, vector<2x128xf32> -> vector<4x128xf32>
    %cst_8 = arith.constant dense<0.000000e+00> : vector<4x256xf32>
    %27 = tpu.matmul %23, %6, %cst_8 {dimension_numbers = #tpu.dot_dimension_numbers<[1], [0], [0], [1], [0, 0, 1, 1], [], []>} : vector<4x32xbf16>, vector<32x256xbf16>, vector<4x256xf32> -> vector<4x256xf32>
    %28 = vector.extract_strided_slice %27 {offsets = [0, 0], sizes = [2, 128], strides = [1, 1]} : vector<4x256xf32> to vector<2x128xf32>
    %29 = vector.extract_strided_slice %27 {offsets = [2, 128], sizes = [2, 128], strides = [1, 1]} : vector<4x256xf32> to vector<2x128xf32>
    %30 = tpu.concatenate %28, %29 in 0 : vector<2x128xf32>, vector<2x128xf32> -> vector<4x128xf32>
    %31 = arith.addf %26, %30 : vector<4x128xf32>
    %32 = vector.extract_strided_slice %31 {offsets = [0, 0], sizes = [4, 96], strides = [1, 1]} : vector<4x128xf32> to vector<4x96xf32>
    %33 = arith.negf %32 : vector<4x96xf32>
    %34 = math.exp %33 : vector<4x96xf32>
    %cst_9 = arith.constant 1.000000e+00 : f32
    %35 = vector.broadcast %cst_9 : f32 to vector<4x96xf32>
    %36 = arith.addf %35, %34 : vector<4x96xf32>
    %37 = arith.divf %35, %36 : vector<4x96xf32>
    %38 = vector.extract_strided_slice %31 {offsets = [0, 96], sizes = [4, 32], strides = [1, 1]} : vector<4x128xf32> to vector<4x32xf32>
    %39 = math.tanh %38 : vector<4x32xf32>
    %40 = vector.extract_strided_slice %37 {offsets = [0, 0], sizes = [4, 32], strides = [1, 1]} : vector<4x96xf32> to vector<4x32xf32>
    %41 = vector.extract_strided_slice %37 {offsets = [0, 32], sizes = [4, 32], strides = [1, 1]} : vector<4x96xf32> to vector<4x32xf32>
    %42 = vector.extract_strided_slice %37 {offsets = [0, 64], sizes = [4, 32], strides = [1, 1]} : vector<4x96xf32> to vector<4x32xf32>
    %43 = arith.mulf %41, %20 : vector<4x32xf32>
    %44 = arith.mulf %40, %39 : vector<4x32xf32>
    %45 = arith.addf %43, %44 : vector<4x32xf32>
    %46 = math.tanh %45 : vector<4x32xf32>
    %47 = arith.mulf %42, %46 : vector<4x32xf32>
    %48 = arith.truncf %47 : vector<4x32xf32> to vector<4x32xbf16>
    %49 = vector.extract_strided_slice %5 {offsets = [4, 0], sizes = [2, 128], strides = [1, 1]} : vector<16x256xf32> to vector<2x128xf32>
    %50 = vector.extract_strided_slice %5 {offsets = [10, 128], sizes = [2, 128], strides = [1, 1]} : vector<16x256xf32> to vector<2x128xf32>
    %51 = tpu.concatenate %49, %50 in 0 : vector<2x128xf32>, vector<2x128xf32> -> vector<4x128xf32>
    %cst_10 = arith.constant dense<0.000000e+00> : vector<4x256xf32>
    %52 = tpu.matmul %48, %6, %cst_10 {dimension_numbers = #tpu.dot_dimension_numbers<[1], [0], [0], [1], [0, 0, 1, 1], [], []>} : vector<4x32xbf16>, vector<32x256xbf16>, vector<4x256xf32> -> vector<4x256xf32>
    %53 = vector.extract_strided_slice %52 {offsets = [0, 0], sizes = [2, 128], strides = [1, 1]} : vector<4x256xf32> to vector<2x128xf32>
    %54 = vector.extract_strided_slice %52 {offsets = [2, 128], sizes = [2, 128], strides = [1, 1]} : vector<4x256xf32> to vector<2x128xf32>
    %55 = tpu.concatenate %53, %54 in 0 : vector<2x128xf32>, vector<2x128xf32> -> vector<4x128xf32>
    %56 = arith.addf %51, %55 : vector<4x128xf32>
    %57 = vector.extract_strided_slice %56 {offsets = [0, 0], sizes = [4, 96], strides = [1, 1]} : vector<4x128xf32> to vector<4x96xf32>
    %58 = arith.negf %57 : vector<4x96xf32>
    %59 = math.exp %58 : vector<4x96xf32>
    %cst_11 = arith.constant 1.000000e+00 : f32
    %60 = vector.broadcast %cst_11 : f32 to vector<4x96xf32>
    %61 = arith.addf %60, %59 : vector<4x96xf32>
    %62 = arith.divf %60, %61 : vector<4x96xf32>
    %63 = vector.extract_strided_slice %56 {offsets = [0, 96], sizes = [4, 32], strides = [1, 1]} : vector<4x128xf32> to vector<4x32xf32>
    %64 = math.tanh %63 : vector<4x32xf32>
    %65 = vector.extract_strided_slice %62 {offsets = [0, 0], sizes = [4, 32], strides = [1, 1]} : vector<4x96xf32> to vector<4x32xf32>
    %66 = vector.extract_strided_slice %62 {offsets = [0, 32], sizes = [4, 32], strides = [1, 1]} : vector<4x96xf32> to vector<4x32xf32>
    %67 = vector.extract_strided_slice %62 {offsets = [0, 64], sizes = [4, 32], strides = [1, 1]} : vector<4x96xf32> to vector<4x32xf32>
    %68 = arith.mulf %66, %45 : vector<4x32xf32>
    %69 = arith.mulf %65, %64 : vector<4x32xf32>
    %70 = arith.addf %68, %69 : vector<4x32xf32>
    %71 = math.tanh %70 : vector<4x32xf32>
    %72 = arith.mulf %67, %71 : vector<4x32xf32>
    %73 = arith.truncf %72 : vector<4x32xf32> to vector<4x32xbf16>
    %74 = vector.extract_strided_slice %5 {offsets = [6, 0], sizes = [2, 128], strides = [1, 1]} : vector<16x256xf32> to vector<2x128xf32>
    %75 = vector.extract_strided_slice %5 {offsets = [8, 128], sizes = [2, 128], strides = [1, 1]} : vector<16x256xf32> to vector<2x128xf32>
    %76 = tpu.concatenate %74, %75 in 0 : vector<2x128xf32>, vector<2x128xf32> -> vector<4x128xf32>
    %cst_12 = arith.constant dense<0.000000e+00> : vector<4x256xf32>
    %77 = tpu.matmul %73, %6, %cst_12 {dimension_numbers = #tpu.dot_dimension_numbers<[1], [0], [0], [1], [0, 0, 1, 1], [], []>} : vector<4x32xbf16>, vector<32x256xbf16>, vector<4x256xf32> -> vector<4x256xf32>
    %78 = vector.extract_strided_slice %77 {offsets = [0, 0], sizes = [2, 128], strides = [1, 1]} : vector<4x256xf32> to vector<2x128xf32>
    %79 = vector.extract_strided_slice %77 {offsets = [2, 128], sizes = [2, 128], strides = [1, 1]} : vector<4x256xf32> to vector<2x128xf32>
    %80 = tpu.concatenate %78, %79 in 0 : vector<2x128xf32>, vector<2x128xf32> -> vector<4x128xf32>
    %81 = arith.addf %76, %80 : vector<4x128xf32>
    %82 = vector.extract_strided_slice %81 {offsets = [0, 0], sizes = [4, 96], strides = [1, 1]} : vector<4x128xf32> to vector<4x96xf32>
    %83 = arith.negf %82 : vector<4x96xf32>
    %84 = math.exp %83 : vector<4x96xf32>
    %cst_13 = arith.constant 1.000000e+00 : f32
    %85 = vector.broadcast %cst_13 : f32 to vector<4x96xf32>
    %86 = arith.addf %85, %84 : vector<4x96xf32>
    %87 = arith.divf %85, %86 : vector<4x96xf32>
    %88 = vector.extract_strided_slice %81 {offsets = [0, 96], sizes = [4, 32], strides = [1, 1]} : vector<4x128xf32> to vector<4x32xf32>
    %89 = math.tanh %88 : vector<4x32xf32>
    %90 = vector.extract_strided_slice %87 {offsets = [0, 0], sizes = [4, 32], strides = [1, 1]} : vector<4x96xf32> to vector<4x32xf32>
    %91 = vector.extract_strided_slice %87 {offsets = [0, 32], sizes = [4, 32], strides = [1, 1]} : vector<4x96xf32> to vector<4x32xf32>
    %92 = vector.extract_strided_slice %87 {offsets = [0, 64], sizes = [4, 32], strides = [1, 1]} : vector<4x96xf32> to vector<4x32xf32>
    %93 = arith.mulf %91, %70 : vector<4x32xf32>
    %94 = arith.mulf %90, %89 : vector<4x32xf32>
    %95 = arith.addf %93, %94 : vector<4x32xf32>
    %96 = math.tanh %95 : vector<4x32xf32>
    %97 = arith.mulf %92, %96 : vector<4x32xf32>
    %98 = arith.truncf %97 : vector<4x32xf32> to vector<4x32xbf16>
    %99 = vector.extract_strided_slice %5 {offsets = [8, 0], sizes = [2, 128], strides = [1, 1]} : vector<16x256xf32> to vector<2x128xf32>
    %100 = vector.extract_strided_slice %5 {offsets = [6, 128], sizes = [2, 128], strides = [1, 1]} : vector<16x256xf32> to vector<2x128xf32>
    %101 = tpu.concatenate %99, %100 in 0 : vector<2x128xf32>, vector<2x128xf32> -> vector<4x128xf32>
    %cst_14 = arith.constant dense<0.000000e+00> : vector<4x256xf32>
    %102 = tpu.matmul %98, %6, %cst_14 {dimension_numbers = #tpu.dot_dimension_numbers<[1], [0], [0], [1], [0, 0, 1, 1], [], []>} : vector<4x32xbf16>, vector<32x256xbf16>, vector<4x256xf32> -> vector<4x256xf32>
    %103 = vector.extract_strided_slice %102 {offsets = [0, 0], sizes = [2, 128], strides = [1, 1]} : vector<4x256xf32> to vector<2x128xf32>
    %104 = vector.extract_strided_slice %102 {offsets = [2, 128], sizes = [2, 128], strides = [1, 1]} : vector<4x256xf32> to vector<2x128xf32>
    %105 = tpu.concatenate %103, %104 in 0 : vector<2x128xf32>, vector<2x128xf32> -> vector<4x128xf32>
    %106 = arith.addf %101, %105 : vector<4x128xf32>
    %107 = vector.extract_strided_slice %106 {offsets = [0, 0], sizes = [4, 96], strides = [1, 1]} : vector<4x128xf32> to vector<4x96xf32>
    %108 = arith.negf %107 : vector<4x96xf32>
    %109 = math.exp %108 : vector<4x96xf32>
    %cst_15 = arith.constant 1.000000e+00 : f32
    %110 = vector.broadcast %cst_15 : f32 to vector<4x96xf32>
    %111 = arith.addf %110, %109 : vector<4x96xf32>
    %112 = arith.divf %110, %111 : vector<4x96xf32>
    %113 = vector.extract_strided_slice %106 {offsets = [0, 96], sizes = [4, 32], strides = [1, 1]} : vector<4x128xf32> to vector<4x32xf32>
    %114 = math.tanh %113 : vector<4x32xf32>
    %115 = vector.extract_strided_slice %112 {offsets = [0, 0], sizes = [4, 32], strides = [1, 1]} : vector<4x96xf32> to vector<4x32xf32>
    %116 = vector.extract_strided_slice %112 {offsets = [0, 32], sizes = [4, 32], strides = [1, 1]} : vector<4x96xf32> to vector<4x32xf32>
    %117 = vector.extract_strided_slice %112 {offsets = [0, 64], sizes = [4, 32], strides = [1, 1]} : vector<4x96xf32> to vector<4x32xf32>
    %118 = arith.mulf %116, %95 : vector<4x32xf32>
    %119 = arith.mulf %115, %114 : vector<4x32xf32>
    %120 = arith.addf %118, %119 : vector<4x32xf32>
    %121 = math.tanh %120 : vector<4x32xf32>
    %122 = arith.mulf %117, %121 : vector<4x32xf32>
    %123 = arith.truncf %122 : vector<4x32xf32> to vector<4x32xbf16>
    %124 = vector.extract_strided_slice %5 {offsets = [10, 0], sizes = [2, 128], strides = [1, 1]} : vector<16x256xf32> to vector<2x128xf32>
    %125 = vector.extract_strided_slice %5 {offsets = [4, 128], sizes = [2, 128], strides = [1, 1]} : vector<16x256xf32> to vector<2x128xf32>
    %126 = tpu.concatenate %124, %125 in 0 : vector<2x128xf32>, vector<2x128xf32> -> vector<4x128xf32>
    %cst_16 = arith.constant dense<0.000000e+00> : vector<4x256xf32>
    %127 = tpu.matmul %123, %6, %cst_16 {dimension_numbers = #tpu.dot_dimension_numbers<[1], [0], [0], [1], [0, 0, 1, 1], [], []>} : vector<4x32xbf16>, vector<32x256xbf16>, vector<4x256xf32> -> vector<4x256xf32>
    %128 = vector.extract_strided_slice %127 {offsets = [0, 0], sizes = [2, 128], strides = [1, 1]} : vector<4x256xf32> to vector<2x128xf32>
    %129 = vector.extract_strided_slice %127 {offsets = [2, 128], sizes = [2, 128], strides = [1, 1]} : vector<4x256xf32> to vector<2x128xf32>
    %130 = tpu.concatenate %128, %129 in 0 : vector<2x128xf32>, vector<2x128xf32> -> vector<4x128xf32>
    %131 = arith.addf %126, %130 : vector<4x128xf32>
    %132 = vector.extract_strided_slice %131 {offsets = [0, 0], sizes = [4, 96], strides = [1, 1]} : vector<4x128xf32> to vector<4x96xf32>
    %133 = arith.negf %132 : vector<4x96xf32>
    %134 = math.exp %133 : vector<4x96xf32>
    %cst_17 = arith.constant 1.000000e+00 : f32
    %135 = vector.broadcast %cst_17 : f32 to vector<4x96xf32>
    %136 = arith.addf %135, %134 : vector<4x96xf32>
    %137 = arith.divf %135, %136 : vector<4x96xf32>
    %138 = vector.extract_strided_slice %131 {offsets = [0, 96], sizes = [4, 32], strides = [1, 1]} : vector<4x128xf32> to vector<4x32xf32>
    %139 = math.tanh %138 : vector<4x32xf32>
    %140 = vector.extract_strided_slice %137 {offsets = [0, 0], sizes = [4, 32], strides = [1, 1]} : vector<4x96xf32> to vector<4x32xf32>
    %141 = vector.extract_strided_slice %137 {offsets = [0, 32], sizes = [4, 32], strides = [1, 1]} : vector<4x96xf32> to vector<4x32xf32>
    %142 = vector.extract_strided_slice %137 {offsets = [0, 64], sizes = [4, 32], strides = [1, 1]} : vector<4x96xf32> to vector<4x32xf32>
    %143 = arith.mulf %141, %120 : vector<4x32xf32>
    %144 = arith.mulf %140, %139 : vector<4x32xf32>
    %145 = arith.addf %143, %144 : vector<4x32xf32>
    %146 = math.tanh %145 : vector<4x32xf32>
    %147 = arith.mulf %142, %146 : vector<4x32xf32>
    %148 = arith.truncf %147 : vector<4x32xf32> to vector<4x32xbf16>
    %149 = vector.extract_strided_slice %5 {offsets = [12, 0], sizes = [2, 128], strides = [1, 1]} : vector<16x256xf32> to vector<2x128xf32>
    %150 = vector.extract_strided_slice %5 {offsets = [2, 128], sizes = [2, 128], strides = [1, 1]} : vector<16x256xf32> to vector<2x128xf32>
    %151 = tpu.concatenate %149, %150 in 0 : vector<2x128xf32>, vector<2x128xf32> -> vector<4x128xf32>
    %cst_18 = arith.constant dense<0.000000e+00> : vector<4x256xf32>
    %152 = tpu.matmul %148, %6, %cst_18 {dimension_numbers = #tpu.dot_dimension_numbers<[1], [0], [0], [1], [0, 0, 1, 1], [], []>} : vector<4x32xbf16>, vector<32x256xbf16>, vector<4x256xf32> -> vector<4x256xf32>
    %153 = vector.extract_strided_slice %152 {offsets = [0, 0], sizes = [2, 128], strides = [1, 1]} : vector<4x256xf32> to vector<2x128xf32>
    %154 = vector.extract_strided_slice %152 {offsets = [2, 128], sizes = [2, 128], strides = [1, 1]} : vector<4x256xf32> to vector<2x128xf32>
    %155 = tpu.concatenate %153, %154 in 0 : vector<2x128xf32>, vector<2x128xf32> -> vector<4x128xf32>
    %156 = arith.addf %151, %155 : vector<4x128xf32>
    %157 = vector.extract_strided_slice %156 {offsets = [0, 0], sizes = [4, 96], strides = [1, 1]} : vector<4x128xf32> to vector<4x96xf32>
    %158 = arith.negf %157 : vector<4x96xf32>
    %159 = math.exp %158 : vector<4x96xf32>
    %cst_19 = arith.constant 1.000000e+00 : f32
    %160 = vector.broadcast %cst_19 : f32 to vector<4x96xf32>
    %161 = arith.addf %160, %159 : vector<4x96xf32>
    %162 = arith.divf %160, %161 : vector<4x96xf32>
    %163 = vector.extract_strided_slice %156 {offsets = [0, 96], sizes = [4, 32], strides = [1, 1]} : vector<4x128xf32> to vector<4x32xf32>
    %164 = math.tanh %163 : vector<4x32xf32>
    %165 = vector.extract_strided_slice %162 {offsets = [0, 0], sizes = [4, 32], strides = [1, 1]} : vector<4x96xf32> to vector<4x32xf32>
    %166 = vector.extract_strided_slice %162 {offsets = [0, 32], sizes = [4, 32], strides = [1, 1]} : vector<4x96xf32> to vector<4x32xf32>
    %167 = vector.extract_strided_slice %162 {offsets = [0, 64], sizes = [4, 32], strides = [1, 1]} : vector<4x96xf32> to vector<4x32xf32>
    %168 = arith.mulf %166, %145 : vector<4x32xf32>
    %169 = arith.mulf %165, %164 : vector<4x32xf32>
    %170 = arith.addf %168, %169 : vector<4x32xf32>
    %171 = math.tanh %170 : vector<4x32xf32>
    %172 = arith.mulf %167, %171 : vector<4x32xf32>
    %173 = arith.truncf %172 : vector<4x32xf32> to vector<4x32xbf16>
    %174 = vector.extract_strided_slice %5 {offsets = [14, 0], sizes = [2, 128], strides = [1, 1]} : vector<16x256xf32> to vector<2x128xf32>
    %175 = vector.extract_strided_slice %5 {offsets = [0, 128], sizes = [2, 128], strides = [1, 1]} : vector<16x256xf32> to vector<2x128xf32>
    %176 = tpu.concatenate %174, %175 in 0 : vector<2x128xf32>, vector<2x128xf32> -> vector<4x128xf32>
    %cst_20 = arith.constant dense<0.000000e+00> : vector<4x256xf32>
    %177 = tpu.matmul %173, %6, %cst_20 {dimension_numbers = #tpu.dot_dimension_numbers<[1], [0], [0], [1], [0, 0, 1, 1], [], []>} : vector<4x32xbf16>, vector<32x256xbf16>, vector<4x256xf32> -> vector<4x256xf32>
    %178 = vector.extract_strided_slice %177 {offsets = [0, 0], sizes = [2, 128], strides = [1, 1]} : vector<4x256xf32> to vector<2x128xf32>
    %179 = vector.extract_strided_slice %177 {offsets = [2, 128], sizes = [2, 128], strides = [1, 1]} : vector<4x256xf32> to vector<2x128xf32>
    %180 = tpu.concatenate %178, %179 in 0 : vector<2x128xf32>, vector<2x128xf32> -> vector<4x128xf32>
    %181 = arith.addf %176, %180 : vector<4x128xf32>
    %182 = vector.extract_strided_slice %181 {offsets = [0, 0], sizes = [4, 96], strides = [1, 1]} : vector<4x128xf32> to vector<4x96xf32>
    %183 = arith.negf %182 : vector<4x96xf32>
    %184 = math.exp %183 : vector<4x96xf32>
    %cst_21 = arith.constant 1.000000e+00 : f32
    %185 = vector.broadcast %cst_21 : f32 to vector<4x96xf32>
    %186 = arith.addf %185, %184 : vector<4x96xf32>
    %187 = arith.divf %185, %186 : vector<4x96xf32>
    %188 = vector.extract_strided_slice %181 {offsets = [0, 96], sizes = [4, 32], strides = [1, 1]} : vector<4x128xf32> to vector<4x32xf32>
    %189 = math.tanh %188 : vector<4x32xf32>
    %190 = vector.extract_strided_slice %187 {offsets = [0, 0], sizes = [4, 32], strides = [1, 1]} : vector<4x96xf32> to vector<4x32xf32>
    %191 = vector.extract_strided_slice %187 {offsets = [0, 32], sizes = [4, 32], strides = [1, 1]} : vector<4x96xf32> to vector<4x32xf32>
    %192 = vector.extract_strided_slice %187 {offsets = [0, 64], sizes = [4, 32], strides = [1, 1]} : vector<4x96xf32> to vector<4x32xf32>
    %193 = arith.mulf %191, %170 : vector<4x32xf32>
    %194 = arith.mulf %190, %189 : vector<4x32xf32>
    %195 = arith.addf %193, %194 : vector<4x32xf32>
    %196 = math.tanh %195 : vector<4x32xf32>
    %197 = arith.mulf %192, %196 : vector<4x32xf32>
    %c0_22 = arith.constant 0 : index
    %c0_23 = arith.constant 0 : index
    %198 = vector.load %arg4[%c0_22, %c0_23] : memref<4x32xf32, #tpu.memory_space<vmem>>, vector<4x32xf32>
    %199 = arith.mulf %197, %198 : vector<4x32xf32>
    %cst_24 = arith.constant dense<0.000000e+00> : vector<4xf32>
    %200 = vector.multi_reduction <add>, %199, %cst_24 [1] : vector<4x32xf32> to vector<4xf32>
    %201 = vector.shape_cast %200 : vector<4xf32> to vector<4x1xf32>
    %202 = vector.extract_strided_slice %201 {offsets = [0, 0], sizes = [2, 1], strides = [1, 1]} : vector<4x1xf32> to vector<2x1xf32>
    %203 = vector.extract_strided_slice %201 {offsets = [2, 0], sizes = [2, 1], strides = [1, 1]} : vector<4x1xf32> to vector<2x1xf32>
    %204 = arith.addf %202, %203 : vector<2x1xf32>
    %c0_25 = arith.constant 0 : index
    %c0_26 = arith.constant 0 : index
    %205 = vector.load %arg5[%c0_25, %c0_26] : memref<1x1xf32, #tpu.memory_space<vmem>>, vector<1x1xf32>
    %206 = vector.broadcast %205 : vector<1x1xf32> to vector<2x1xf32>
    %207 = arith.addf %204, %206 : vector<2x1xf32>
    %c0_27 = arith.constant 0 : index
    %c0_28 = arith.constant 0 : index
    %208 = vector.load %arg6[%c0_27, %c0_28] : memref<2x1xf32, #tpu.memory_space<vmem>>, vector<2x1xf32>
    tpu.vector_store %arg6[%c0_27, %c0_28], %207 {strides = array<i32>} : memref<2x1xf32, #tpu.memory_space<vmem>>, vector<2x1xf32>,
    return
  }
}

</mosaic_0001>

<bundles_post_ra>
// kernel: tpu_custom_call.1
= control target key start
LH: loop header
LB: loop body
LE: loop exit
PB: predicated region body
PF: predicated region fallthrough
CT: control target
= control target key end

     0   :  { %s1153_s0 = inlined_call_operand.hbm [shape: bf16[16,32], index: 0, kind: input, shape index: {}]   ;;  %s1154_s1 = inlined_call_operand.hbm [shape: bf16[32,256], index: 1, kind: input, shape index: {}]   ;;  %s1155_s2 = inlined_call_operand.vmem [shape: f32[1,256], index: 2, kind: input, shape index: {}]   ;;  %s1156_s3 = inlined_call_operand.hbm [shape: bf16[32,256], index: 3, kind: input, shape index: {}]   ;;  %s1157_s4 = inlined_call_operand.vmem [shape: f32[4,32], index: 4, kind: input, shape index: {}]   ;;  %s1158_s5 = inlined_call_operand.<no memory space> [shape: f32[1,1], index: 5, kind: input, shape index: {}]   ;;  %s1159_s6 = inlined_call_operand.vmem [shape: f32[2,1], index: 6, kind: output, shape index: {}]  }
   0x1   :  { %v11_v0 = vstv %s1158_s5 }
   0x2   :  { %12 = vst [vmem:[#allocation2] sm:$0x1] %v11_v0 }
   0x3   :  { %13 = vsyncpa [#allocation4], 0 }
   0x4   :  { %14 = vsyncpa [#allocation6], 0  ;;  %s968_s23 = smov [#allocation5]  }
   0x5   :  { %s32_s24 = sshll.u32 %s968_s23, 4  ;;  %s33_s24 = int_to_ptr.vmem [resolvable:$true] %s32_s24 }
   0x6   :  { %s912_s25 = scalar_lea.vmem %s33_s24, 512  ;;  %p917_p1 = scmp.lt.s32.totalorder %s33_s24, %s33_s24 }
   0x7   :  { %p913_p0 = scmp.ne.s32.totalorder %s33_s24, %s912_s25  ;;  %p918_p2 = scmp.lt.s32.totalorder %s912_s25, %s912_s25 }
   0x9   :  { %p919_p3 = por %p918_p2, %p917_p1 }
   0xb   :  { %p920_p4 = pnand %p919_p3, %p913_p0 }
   0xd   :  { %923 = shalt.err (!%p920_p4)
}
   0xe   :  { %s969_s26 = smov 128   ;;  %s970_s27 = smov 8  }
   0xf   :  { %38 = dma.hbm_to_vmem [thread:$0]  %s1154_s1, 512, %s33_s24, [#allocation6], %s969_s26, %s969_s26, %s970_s27  }
  0x10   :  { %s971_s5 = smov [#allocation3]  }
  0x11   :  { %s20_s30 = sshll.u32 %s971_s5, 4  ;;  %s21_s30 = int_to_ptr.vmem [resolvable:$true] %s20_s30 }
  0x12   :  { %s932_s7 = scalar_lea.vmem %s21_s30, 128  ;;  %p937_p6 = scmp.lt.s32.totalorder %s21_s30, %s21_s30 }
  0x13   :  { %p933_p5 = scmp.ne.s32.totalorder %s21_s30, %s932_s7  ;;  %p938_p7 = scmp.lt.s32.totalorder %s932_s7, %s932_s7 }
  0x15   :  { %p939_p8 = por %p938_p7, %p937_p6 }
  0x17   :  { %p940_p9 = pnand %p939_p8, %p933_p5 }
  0x19   :  { %943 = shalt.err (!%p940_p9)
}
  0x1a   :  { %s972_s8 = smov 64   ;;  %s973_s9 = smov 4  }
  0x1b   :  { %26 = dma.hbm_to_vmem [thread:$0]  %s1153_s0, 128, %s21_s30, [#allocation4], %s972_s8, %s972_s8, %s973_s9  }
  0x1c   :  { %s974_s12 = smov [#allocation7]  }
  0x1d   :  { %s46_s1 = sshll.u32 %s974_s12, 4  ;;  %s47_s1 = int_to_ptr.vmem [resolvable:$true] %s46_s1 }
  0x1e   :  { %s952_s13 = scalar_lea.vmem %s47_s1, 512  ;;  %p957_p11 = scmp.lt.s32.totalorder %s47_s1, %s47_s1 }
  0x1f   :  { %p953_p10 = scmp.ne.s32.totalorder %s47_s1, %s952_s13  ;;  %p958_p12 = scmp.lt.s32.totalorder %s952_s13, %s952_s13 }
  0x21   :  { %p959_p13 = por %p958_p12, %p957_p11 }
  0x23   :  { %p960_p0 = pnand %p959_p13, %p953_p10 }
  0x25   :  { %963 = shalt.err (!%p960_p0)
}
  0x26   :  { %52 = dma.hbm_to_vmem [thread:$0]  %s1156_s3, 512, %s47_s1, [#allocation6], %s969_s26, %s969_s26, %s970_s27  }
  0x27   :  { %964 = dma.done.wait [#allocation4], 128  }
  0x28   :  { %965 = vsyncadd [#allocation4], 4294967168 }
  0x29   :  { %966 = dma.done.wait [#allocation6], 1024  }
  0x2a   :  { %967 = vsyncadd [#allocation6], 4294966272  ;;  %v975_v1 = vmov 0   ;;  %v827_v2 = vld [vmem:[#allocation5 + $0x14] ss:$8 sps:$4 sm:$0xff]   ;;  %vm110_vm0 = vcmask 261120   ;;  %v75_v7 = vlaneseq }
  0x2b   :  { %146 = vmatprep.mubr.bf16.mxu0 %v975_v1  ;;  %249 = vmatprep.mubr.bf16.mxu1 %v975_v1  ;;  %v829_v3 = vld [vmem:[#allocation5 + $0x10] ss:$8 sps:$4 sm:$0xff]   ;;  %v830_v4 = vld [vmem:[#allocation5 + $0x4] ss:$8 sps:$4 sm:$0xff]   ;;  %v832_v5 = vld [vmem:[#allocation5] ss:$8 sps:$4 sm:$0xff]  }
  0x2c   :  { %126 = vmatprep.subr.bf16.mxu0 %v827_v2  ;;  %v833_v6 = vld [vmem:[#allocation3] sm:$0xff]   ;;  %v76_v8 = vshrl.u32 %v75_v7, 7  ;;  %vm164_vm1 = vcmask 1041408   ;;  %v1058_v51 = vld [vmem:[#allocation7 + $0x4] ss:$8 sps:$4 sm:$0xff]   ;;  %vm768_vm2 = vcmask 257024  }
  0x2d   :  { %127 = vmatpush1.bf16.msra.mxu0 %v829_v3  ;;  %v73_v10 = vld [vmem:[%s1155_s2] sm:$0x3]  ;;  %s976_s2 = smov 32   ;;  %v1063_v52 = vld [vmem:[#allocation7] ss:$8 sps:$4 sm:$0xff]   ;;  %vm784_vm3 = vcmask 1024  }
  0x2e   :  { %128 = vmatprep.subr.bf16.mxu0 %v830_v4  ;;  %v77_v9 = vsub.s32 0, %v76_v8  ;;  %v81_v11 = vsub.s32 1, %v76_v8  ;;  %v1054_v49 = vld [vmem:[#allocation7 + $0x14] ss:$8 sps:$4 sm:$0xff]   ;;  %v1056_v50 = vld [vmem:[#allocation7 + $0x10] ss:$8 sps:$4 sm:$0xff]  }
  0x2f   :  { %229 = vmatprep.subr.bf16.mxu1 %v1054_v49 }
  0x30   :  { %v78_v12 = vrot.slane %v73_v10, %v77_v9  ;;  %v82_v13 = vrot.slane %v73_v10, %v81_v11  ;;  %230 = vmatpush1.bf16.msra.mxu1 %v1056_v50 }
  0x31   :  { %129 = vmatpush1.bf16.msra.mxu0 %v832_v5  ;;  %231 = vmatprep.subr.bf16.mxu1 %v1058_v51 }
  0x32   :  { %310 = vmatprep.subr.bf16.mxu0 %v1054_v49 }
  0x34   :  { %797 = vmatmul.mubr.msk.bf16.vlgmr.msra.gmra.mxu0 %vm110_vm0, %v833_v6  ;;  %232 = vmatpush1.bf16.msra.mxu1 %v1063_v52 }
  0x35   :  { %330 = vmatprep.mubr.bf16.mxu0 %v975_v1  ;;  %311 = vmatpush1.bf16.msra.mxu0 %v1056_v50 }
  0x36   :  { %312 = vmatprep.subr.bf16.mxu0 %v1058_v51  ;;  %389 = vmatprep.subr.bf16.mxu1 %v1054_v49 }
  0x39   :  { %313 = vmatpush1.bf16.msra.mxu0 %v1063_v52 }
  0x3a   :  { %467 = vmatprep.subr.bf16.mxu0 %v1054_v49 }
  0xf4   :  { %v148_v14 = vpop.f32.mrf.mxu0 }
  0xf5   :  { %v149_v15 = vadd.f32 %v148_v14, %v78_v12 }
  0xf6   :  { %v150_v16 = vpop.f32.mrf.mxu0 }
  0xf7   :  { %v151_v17 = vadd.f32 %v150_v16, %v82_v13  ;;  %v186_v22 = vrot.slane %v149_v15, 2  ;;  %v289_v23 = vrot.slane %v149_v15, 4  ;;  %v366_v28 = vrot.slane %v149_v15, 6 }
  0xf8   :  { %v152_v18 = vpop.f32.mrf.mxu0 }
  0xf9   :  { %v153_v19 = vadd.f32 %v152_v18, %v78_v12  ;;  %v446_v20 = vrot.slane %v151_v17, 4  ;;  %v526_v29 = vrot.slane %v151_v17, 2  ;;  %v682_v31 = vrot.slane %v151_v17, 6 }
  0xfa   :  { %v154_v21 = vpop.f32.mrf.mxu0 }
  0xfb   :  { %v155_v24 = vadd.f32 %v154_v21, %v82_v13  ;;  %v1034_v25 = vsel %vm164_vm1, %v153_v19, %v446_v20  ;;  %v524_v26 = vrot.slane %v153_v19, 2  ;;  %v603_v27 = vrot.slane %v153_v19, 4 }
  0xfc   :  { %v680_v30 = vrot.slane %v153_v19, 6 }
  0xfd   :  { %v162_v32 = vrot.slane %v155_v24, 4  ;;  %v188_v33 = vrot.slane %v155_v24, 2  ;;  %v1037_v34 = vsel %vm164_vm1, %v289_v23, %v155_v24  ;;  %v368_v35 = vrot.slane %v155_v24, 6 }
  0xfe   :  { %v1040_v36 = vsel %vm164_vm1, %v524_v26, %v526_v29  ;;  %v1043_v37 = vsel %vm164_vm1, %v603_v27, %v151_v17  ;;  %v1046_v38 = vsel %vm164_vm1, %v680_v30, %v682_v31 }
  0xff   :  { %v165_v39 = vsel %vm164_vm1, %v149_v15, %v162_v32  ;;  %v190_v40 = vsel %vm164_vm1, %v186_v22, %v188_v33  ;;  %v1051_v41 = vsel %vm164_vm1, %v366_v28, %v368_v35 }
 0x100   :  { %840 = vtanh.f32 %v165_v39  ;;  %v798_v43 = vmul.f32 -1.442695, %v165_v39 }
 0x102   :  { %842 = vpow2.f32 %v798_v43 }
 0x10d   :  { %v841_v42 = vpop.eup %840 }
 0x10e   :  { %174 = vrot.lane.b32.xlu0 %v841_v42, %s976_s2 }
 0x10f   :  { %v843_v44 = vpop.eup %842 }
 0x110   :  { %v169_v45 = vadd.f32 1.0, %v843_v44 }
 0x112   :  { %844 = vrcp.f32 %v169_v45 }
 0x11f   :  { %v845_v46 = vpop.eup %844 }
 0x180   :  { %v175_v47 = vpop.permute.xlu0 %174 }
 0x181   :  { %v177_v48 = vmul.f32 %v845_v46, %v175_v47 }
 0x183   :  { %846 = vtanh.f32 %v177_v48 }
 0x190   :  { %v847_v53 = vpop.eup %846 }
 0x191   :  { %180 = vrot.lane.b32.xlu0 %v847_v53, %s972_s8 }
 0x195   :  { %268 = vrot.lane.b32.xlu0 %v177_v48, %s976_s2 }
 0x203   :  { %v181_v54 = vpop.permute.xlu0 %180 }
 0x204   :  { %v183_v55 = vmul.f32 %v845_v46, %v181_v54 }
 0x206   :  { %v184_v56 = vpack.c.bf16 %v183_v55, %v183_v55 }
 0x207   :  { %v269_v8 = vpop.permute.xlu0 %268 }
 0x208   :  { %192 = vrot.lane.b32.xlu1 %v184_v56, %s972_s8 }
 0x27a   :  { %v193_v57 = vpop.permute.xlu1 %192 }
 0x27b   :  { %803 = vmatmul.mubr.msk.bf16.vlgmr.msra.gmra.mxu1 %vm110_vm0, %v193_v57 }
 0x27c   :  { %390 = vmatpush1.bf16.msra.mxu1 %v1056_v50  ;;  %409 = vmatprep.mubr.bf16.mxu1 %v975_v1 }
 0x27d   :  { %391 = vmatprep.subr.bf16.mxu1 %v1058_v51 }
 0x280   :  { %392 = vmatpush1.bf16.msra.mxu1 %v1063_v52 }
 0x281   :  { %547 = vmatprep.subr.bf16.mxu1 %v1054_v49 }
 0x33b   :  { %v251_v58 = vpop.f32.mrf.mxu1 }
 0x33d   :  { %v253_v59 = vpop.f32.mrf.mxu1 }
 0x33e   :  { %v258_v60 = vsel %vm164_vm1, %v251_v58, %v253_v59 }
 0x33f   :  { %v259_v61 = vadd.f32 %v258_v60, %v190_v40  ;;  %v255_v62 = vpop.f32.mrf.mxu1 }
 0x341   :  { %848 = vtanh.f32 %v259_v61  ;;  %v256_v63 = vpop.f32.mrf.mxu1  ;;  %v804_v2 = vmul.f32 -1.442695, %v259_v61 }
 0x343   :  { %850 = vpow2.f32 %v804_v2 }
 0x34e   :  { %v849_v0 = vpop.eup %848 }
 0x34f   :  { %273 = vrot.lane.b32.xlu1 %v849_v0, %s976_s2 }
 0x350   :  { %v851_v3 = vpop.eup %850 }
 0x351   :  { %v263_v4 = vadd.f32 1.0, %v851_v3 }
 0x353   :  { %852 = vrcp.f32 %v263_v4 }
 0x360   :  { %v853_v5 = vpop.eup %852 }
 0x361   :  { %v271_v9 = vmul.f32 %v853_v5, %v269_v8 }
 0x3c1   :  { %v274_v6 = vpop.permute.xlu1 %273 }
 0x3c2   :  { %v276_v7 = vmul.f32 %v853_v5, %v274_v6 }
 0x3c4   :  { %278 = vrot.lane.b32.xlu1 %v276_v7, %s976_s2 }
 0x436   :  { %v279_v10 = vpop.permute.xlu1 %278 }
 0x437   :  { %v281_v11 = vadd.f32 %v279_v10, %v271_v9 }
 0x439   :  { %854 = vtanh.f32 %v281_v11 }
 0x446   :  { %v855_v12 = vpop.eup %854 }
 0x447   :  { %284 = vrot.lane.b32.xlu0 %v855_v12, %s976_s2 }
 0x4b9   :  { %v285_v13 = vpop.permute.xlu0 %284 }
 0x4ba   :  { %v287_v14 = vmul.f32 %v853_v5, %v285_v13 }
 0x4bc   :  { %v288_v15 = vpack.c.bf16 %v287_v14, %v287_v14 }
 0x4be   :  { %293 = vrot.lane.b32.xlu1 %v288_v15, %s972_s8 }
 0x530   :  { %v294_v16 = vpop.permute.xlu1 %293 }
 0x531   :  { %805 = vmatmul.mubr.msk.bf16.vlgmr.msra.gmra.mxu0 %vm110_vm0, %v294_v16 }
 0x532   :  { %468 = vmatpush1.bf16.msra.mxu0 %v1056_v50  ;;  %487 = vmatprep.mubr.bf16.mxu0 %v975_v1 }
 0x533   :  { %469 = vmatprep.subr.bf16.mxu0 %v1058_v51 }
 0x536   :  { %470 = vmatpush1.bf16.msra.mxu0 %v1063_v52 }
 0x537   :  { %624 = vmatprep.subr.bf16.mxu0 %v1054_v49 }
 0x5f1   :  { %v332_v17 = vpop.f32.mrf.mxu0 }
 0x5f3   :  { %v334_v18 = vpop.f32.mrf.mxu0 }
 0x5f4   :  { %v339_v19 = vsel %vm164_vm1, %v332_v17, %v334_v18 }
 0x5f5   :  { %v340_v20 = vadd.f32 %v339_v19, %v1037_v34  ;;  %v336_v21 = vpop.f32.mrf.mxu0 }
 0x5f7   :  { %856 = vtanh.f32 %v340_v20  ;;  %v337_v22 = vpop.f32.mrf.mxu0  ;;  %v806_v24 = vmul.f32 -1.442695, %v340_v20 }
 0x5f9   :  { %858 = vpow2.f32 %v806_v24 }
 0x604   :  { %v857_v23 = vpop.eup %856 }
 0x605   :  { %350 = vrot.lane.b32.xlu0 %v857_v23, %s976_s2 }
 0x606   :  { %v859_v26 = vpop.eup %858 }
 0x607   :  { %v344_v27 = vadd.f32 1.0, %v859_v26 }
 0x609   :  { %860 = vrcp.f32 %v344_v27 }
 0x616   :  { %v861_v28 = vpop.eup %860 }
 0x617   :  { %v348_v31 = vmul.f32 %v861_v28, %v281_v11 }
 0x677   :  { %v351_v29 = vpop.permute.xlu0 %350 }
 0x678   :  { %v353_v30 = vmul.f32 %v861_v28, %v351_v29 }
 0x67a   :  { %355 = vrot.lane.b32.xlu1 %v353_v30, %s976_s2 }
 0x6ec   :  { %v356_v32 = vpop.permute.xlu1 %355 }
 0x6ed   :  { %v358_v33 = vadd.f32 %v356_v32, %v348_v31 }
 0x6ef   :  { %862 = vtanh.f32 %v358_v33 }
 0x6fc   :  { %v863_v34 = vpop.eup %862 }
 0x6fd   :  { %361 = vrot.lane.b32.xlu0 %v863_v34, %s976_s2 }
 0x76f   :  { %v362_v35 = vpop.permute.xlu0 %361 }
 0x770   :  { %v364_v39 = vmul.f32 %v861_v28, %v362_v35 }
 0x772   :  { %v365_v40 = vpack.c.bf16 %v364_v39, %v364_v39 }
 0x774   :  { %372 = vrot.lane.b32.xlu1 %v365_v40, %s972_s8 }
 0x7e6   :  { %v373_v42 = vpop.permute.xlu1 %372 }
 0x7e7   :  { %807 = vmatmul.mubr.msk.bf16.vlgmr.msra.gmra.mxu1 %vm110_vm0, %v373_v42 }
 0x7e8   :  { %548 = vmatpush1.bf16.msra.mxu1 %v1056_v50  ;;  %567 = vmatprep.mubr.bf16.mxu1 %v975_v1 }
 0x7e9   :  { %549 = vmatprep.subr.bf16.mxu1 %v1058_v51 }
 0x7ec   :  { %550 = vmatpush1.bf16.msra.mxu1 %v1063_v52 }
 0x7ed   :  { %703 = vmatprep.subr.bf16.mxu1 %v1054_v49 }
 0x8a7   :  { %v411_v43 = vpop.f32.mrf.mxu1 }
 0x8a9   :  { %v413_v44 = vpop.f32.mrf.mxu1 }
 0x8aa   :  { %v418_v45 = vsel %vm164_vm1, %v411_v43, %v413_v44 }
 0x8ab   :  { %v419_v46 = vadd.f32 %v418_v45, %v1051_v41  ;;  %v415_v47 = vpop.f32.mrf.mxu1 }
 0x8ad   :  { %864 = vtanh.f32 %v419_v46  ;;  %v416_v48 = vpop.f32.mrf.mxu1  ;;  %v808_v54 = vmul.f32 -1.442695, %v419_v46 }
 0x8af   :  { %866 = vpow2.f32 %v808_v54 }
 0x8ba   :  { %v865_v53 = vpop.eup %864 }
 0x8bb   :  { %429 = vrot.lane.b32.xlu0 %v865_v53, %s976_s2 }
 0x8bc   :  { %v867_v55 = vpop.eup %866 }
 0x8bd   :  { %v423_v56 = vadd.f32 1.0, %v867_v55 }
 0x8bf   :  { %868 = vrcp.f32 %v423_v56 }
 0x8cc   :  { %v869_v57 = vpop.eup %868 }
 0x8cd   :  { %v427_v59 = vmul.f32 %v869_v57, %v358_v33 }
 0x92d   :  { %v430_v58 = vpop.permute.xlu0 %429 }
 0x92e   :  { %v432_v49 = vmul.f32 %v869_v57, %v430_v58 }
 0x930   :  { %434 = vrot.lane.b32.xlu1 %v432_v49, %s976_s2 }
 0x9a2   :  { %v435_v60 = vpop.permute.xlu1 %434 }
 0x9a3   :  { %v437_v61 = vadd.f32 %v435_v60, %v427_v59 }
 0x9a5   :  { %870 = vtanh.f32 %v437_v61 }
 0x9b2   :  { %v871_v41 = vpop.eup %870 }
 0x9b3   :  { %440 = vrot.lane.b32.xlu0 %v871_v41, %s976_s2 }
 0xa25   :  { %v441_v62 = vpop.permute.xlu0 %440 }
 0xa26   :  { %v443_v63 = vmul.f32 %v869_v57, %v441_v62 }
 0xa28   :  { %v444_v0 = vpack.c.bf16 %v443_v63, %v443_v63 }
 0xa2a   :  { %450 = vrot.lane.b32.xlu1 %v444_v0, %s972_s8 }
 0xa9c   :  { %v451_v2 = vpop.permute.xlu1 %450 }
 0xa9d   :  { %809 = vmatmul.mubr.msk.bf16.vlgmr.msra.gmra.mxu0 %vm110_vm0, %v451_v2 }
 0xa9e   :  { %625 = vmatpush1.bf16.msra.mxu0 %v1056_v50  ;;  %644 = vmatprep.mubr.bf16.mxu0 %v975_v1 }
 0xa9f   :  { %626 = vmatprep.subr.bf16.mxu0 %v1058_v51 }
 0xaa2   :  { %627 = vmatpush1.bf16.msra.mxu0 %v1063_v52 }
 0xb5d   :  { %v489_v3 = vpop.f32.mrf.mxu0 }
 0xb5f   :  { %v491_v4 = vpop.f32.mrf.mxu0 }
 0xb60   :  { %v496_v5 = vsel %vm164_vm1, %v489_v3, %v491_v4 }
 0xb61   :  { %v497_v6 = vadd.f32 %v496_v5, %v1034_v25  ;;  %v493_v7 = vpop.f32.mrf.mxu0 }
 0xb63   :  { %872 = vtanh.f32 %v497_v6  ;;  %v494_v8 = vpop.f32.mrf.mxu0  ;;  %v810_v10 = vmul.f32 -1.442695, %v497_v6 }
 0xb65   :  { %874 = vpow2.f32 %v810_v10 }
 0xb70   :  { %v873_v9 = vpop.eup %872 }
 0xb71   :  { %507 = vrot.lane.b32.xlu0 %v873_v9, %s976_s2 }
 0xb72   :  { %v875_v11 = vpop.eup %874 }
 0xb73   :  { %v501_v12 = vadd.f32 1.0, %v875_v11 }
 0xb75   :  { %876 = vrcp.f32 %v501_v12 }
 0xb82   :  { %v877_v13 = vpop.eup %876 }
 0xb83   :  { %v505_v16 = vmul.f32 %v877_v13, %v437_v61 }
 0xbe3   :  { %v508_v14 = vpop.permute.xlu0 %507 }
 0xbe4   :  { %v510_v15 = vmul.f32 %v877_v13, %v508_v14 }
 0xbe6   :  { %512 = vrot.lane.b32.xlu1 %v510_v15, %s976_s2 }
 0xc58   :  { %v513_v17 = vpop.permute.xlu1 %512 }
 0xc59   :  { %v515_v18 = vadd.f32 %v513_v17, %v505_v16 }
 0xc5b   :  { %878 = vtanh.f32 %v515_v18 }
 0xc68   :  { %v879_v25 = vpop.eup %878 }
 0xc69   :  { %518 = vrot.lane.b32.xlu0 %v879_v25, %s976_s2 }
 0xcdb   :  { %v519_v19 = vpop.permute.xlu0 %518 }
 0xcdc   :  { %v521_v20 = vmul.f32 %v877_v13, %v519_v19 }
 0xcde   :  { %v522_v21 = vpack.c.bf16 %v521_v20, %v521_v20 }
 0xce0   :  { %530 = vrot.lane.b32.xlu1 %v522_v21, %s972_s8 }
 0xd52   :  { %v531_v22 = vpop.permute.xlu1 %530 }
 0xd53   :  { %811 = vmatmul.mubr.msk.bf16.vlgmr.msra.gmra.mxu1 %vm110_vm0, %v531_v22 }
 0xd54   :  { %704 = vmatpush1.bf16.msra.mxu1 %v1056_v50  ;;  %723 = vmatprep.mubr.bf16.mxu1 %v975_v1 }
 0xd55   :  { %705 = vmatprep.subr.bf16.mxu1 %v1058_v51 }
 0xd58   :  { %706 = vmatpush1.bf16.msra.mxu1 %v1063_v52 }
 0xe13   :  { %v569_v23 = vpop.f32.mrf.mxu1 }
 0xe15   :  { %v571_v24 = vpop.f32.mrf.mxu1 }
 0xe16   :  { %v576_v26 = vsel %vm164_vm1, %v569_v23, %v571_v24 }
 0xe17   :  { %v577_v27 = vadd.f32 %v576_v26, %v1040_v36  ;;  %v573_v28 = vpop.f32.mrf.mxu1 }
 0xe18   :  { %v817_v28 = vld [vmem:[#allocation2] ss:$0 sm:$0xff] }
 0xe19   :  { %880 = vtanh.f32 %v577_v27  ;;  %v574_v29 = vpop.f32.mrf.mxu1  ;;  %v812_v31 = vmul.f32 -1.442695, %v577_v27 }
 0xe1b   :  { %882 = vpow2.f32 %v812_v31 }
 0xe26   :  { %v881_v30 = vpop.eup %880 }
 0xe27   :  { %587 = vrot.lane.b32.xlu0 %v881_v30, %s976_s2 }
 0xe28   :  { %v883_v50 = vpop.eup %882 }
 0xe29   :  { %v581_v1 = vadd.f32 1.0, %v883_v50 }
 0xe2b   :  { %884 = vrcp.f32 %v581_v1 }
 0xe38   :  { %v885_v51 = vpop.eup %884 }
 0xe39   :  { %v585_v33 = vmul.f32 %v885_v51, %v515_v18 }
 0xe99   :  { %v588_v32 = vpop.permute.xlu0 %587 }
 0xe9a   :  { %v590_v52 = vmul.f32 %v885_v51, %v588_v32 }
 0xe9c   :  { %592 = vrot.lane.b32.xlu1 %v590_v52, %s976_s2 }
 0xf0e   :  { %v593_v34 = vpop.permute.xlu1 %592 }
 0xf0f   :  { %v595_v35 = vadd.f32 %v593_v34, %v585_v33 }
 0xf11   :  { %886 = vtanh.f32 %v595_v35 }
 0xf1e   :  { %v887_v36 = vpop.eup %886 }
 0xf1f   :  { %598 = vrot.lane.b32.xlu0 %v887_v36, %s976_s2 }
 0xf91   :  { %v599_v39 = vpop.permute.xlu0 %598 }
 0xf92   :  { %v601_v40 = vmul.f32 %v885_v51, %v599_v39 }
 0xf94   :  { %v602_v42 = vpack.c.bf16 %v601_v40, %v601_v40 }
 0xf96   :  { %607 = vrot.lane.b32.xlu1 %v602_v42, %s972_s8 }
0x1008   :  { %v608_v43 = vpop.permute.xlu1 %607 }
0x1009   :  { %813 = vmatmul.mubr.msk.bf16.vlgmr.msra.gmra.mxu0 %vm110_vm0, %v608_v43 }
0x10c9   :  { %v646_v44 = vpop.f32.mrf.mxu0 }
0x10cb   :  { %v648_v45 = vpop.f32.mrf.mxu0 }
0x10cc   :  { %v653_v46 = vsel %vm164_vm1, %v646_v44, %v648_v45 }
0x10cd   :  { %v654_v47 = vadd.f32 %v653_v46, %v1043_v37  ;;  %v650_v48 = vpop.f32.mrf.mxu0 }
0x10cf   :  { %888 = vtanh.f32 %v654_v47  ;;  %v651_v53 = vpop.f32.mrf.mxu0  ;;  %v814_v55 = vmul.f32 -1.442695, %v654_v47 }
0x10d1   :  { %890 = vpow2.f32 %v814_v55 }
0x10dc   :  { %v889_v54 = vpop.eup %888 }
0x10dd   :  { %664 = vrot.lane.b32.xlu0 %v889_v54, %s976_s2 }
0x10de   :  { %v891_v56 = vpop.eup %890 }
0x10df   :  { %v658_v57 = vadd.f32 1.0, %v891_v56 }
0x10e1   :  { %892 = vrcp.f32 %v658_v57 }
0x10ee   :  { %v893_v58 = vpop.eup %892 }
0x10ef   :  { %v662_v60 = vmul.f32 %v893_v58, %v595_v35 }
0x114f   :  { %v665_v49 = vpop.permute.xlu0 %664 }
0x1150   :  { %v667_v59 = vmul.f32 %v893_v58, %v665_v49 }
0x1152   :  { %669 = vrot.lane.b32.xlu1 %v667_v59, %s976_s2 }
0x11c4   :  { %v670_v61 = vpop.permute.xlu1 %669 }
0x11c5   :  { %v672_v41 = vadd.f32 %v670_v61, %v662_v60 }
0x11c7   :  { %894 = vtanh.f32 %v672_v41 }
0x11d4   :  { %v895_v37 = vpop.eup %894 }
0x11d5   :  { %675 = vrot.lane.b32.xlu0 %v895_v37, %s976_s2 }
0x1247   :  { %v676_v62 = vpop.permute.xlu0 %675 }
0x1248   :  { %v678_v63 = vmul.f32 %v893_v58, %v676_v62 }
0x124a   :  { %v679_v0 = vpack.c.bf16 %v678_v63, %v678_v63 }
0x124c   :  { %686 = vrot.lane.b32.xlu1 %v679_v0, %s972_s8 }
0x12be   :  { %v687_v2 = vpop.permute.xlu1 %686 }
0x12bf   :  { %815 = vmatmul.mubr.msk.bf16.vlgmr.msra.gmra.mxu1 %vm110_vm0, %v687_v2 }
0x137f   :  { %v725_v3 = vpop.f32.mrf.mxu1 }
0x1381   :  { %v727_v4 = vpop.f32.mrf.mxu1 }
0x1382   :  { %v732_v5 = vsel %vm164_vm1, %v725_v3, %v727_v4 }
0x1383   :  { %v733_v6 = vadd.f32 %v732_v5, %v1046_v38  ;;  %v729_v7 = vpop.f32.mrf.mxu1  ;;  %v758_v38 = vld [vmem:[%s1157_s4] sm:$0xf] }
0x1385   :  { %896 = vtanh.f32 %v733_v6  ;;  %v730_v8 = vpop.f32.mrf.mxu1  ;;  %v816_v10 = vmul.f32 -1.442695, %v733_v6 }
0x1387   :  { %898 = vpow2.f32 %v816_v10 }
0x1392   :  { %v897_v9 = vpop.eup %896 }
0x1393   :  { %743 = vrot.lane.b32.xlu0 %v897_v9, %s976_s2 }
0x1394   :  { %v899_v11 = vpop.eup %898 }
0x1395   :  { %v737_v12 = vadd.f32 1.0, %v899_v11 }
0x1397   :  { %900 = vrcp.f32 %v737_v12 }
0x13a4   :  { %v901_v13 = vpop.eup %900 }
0x13a5   :  { %v741_v16 = vmul.f32 %v901_v13, %v672_v41 }
0x1405   :  { %v744_v14 = vpop.permute.xlu0 %743 }
0x1406   :  { %v746_v15 = vmul.f32 %v901_v13, %v744_v14 }
0x1408   :  { %748 = vrot.lane.b32.xlu1 %v746_v15, %s976_s2 }
0x140c   :  { %760 = vrot.lane.b32.xlu1 %v758_v38, %s972_s8 }
0x147a   :  { %v749_v17 = vpop.permute.xlu1 %748 }
0x147b   :  { %v751_v18 = vadd.f32 %v749_v17, %v741_v16 }
0x147d   :  { %902 = vtanh.f32 %v751_v18 }
0x147e   :  { %v761_v20 = vpop.permute.xlu1 %760 }
0x148a   :  { %v903_v25 = vpop.eup %902 }
0x148b   :  { %754 = vrot.lane.b32.xlu0 %v903_v25, %s976_s2 }
0x14fd   :  { %v755_v19 = vpop.permute.xlu0 %754 }
0x14fe   :  { %v757_v21 = vmul.f32 %v901_v13, %v755_v19 }
0x1500   :  { %v763_v22 = vmul.f32 %v761_v20, %v757_v21 }
0x1502   :  { %765 = vrot.lane.b32.xlu0 %v763_v22, %s972_s8 }
0x1574   :  { %v766_v23 = vpop.permute.xlu0 %765 }
0x1575   :  { %v769_v24 = vsel %vm768_vm2, %v766_v23, 0.0 }
0x1576   :  { %770 = vadd.xlane.f32.xlu1 %v769_v24 }
0x15ff   :  { %v771_v26 = vpop.xlane.xlu1 %770 }
0x1600   :  { %v773_v27 = vrot.slane %v771_v26, 2 }
0x1602   :  { %v775_v29 = vadd.f32 %v773_v27, %v771_v26 }
0x1604   :  { %v783_v30 = vadd.f32 %v817_v28, %v775_v29 }
0x1606   :  { %785 = vst.msk [vmem:[%s1159_s6] sm:$0x3] %vm784_vm3, %v783_v30 }
0x1607   :  { %790 = vsyncpa [#allocation4], 1 }
0x1608   :  { %791 = vsyncpa [#allocation6], 1 }

</bundles_post_ra>
